<compile_context>
chip_gen: v7x
topology: tpu7x:2x2x1
jax: 0.10.0
libtpu: 0.0.40
codegen_flags: <defaults>
</compile_context>

<pallas_src>
import functools

import jax
import jax.numpy as jnp
from jax import lax
from jax.experimental import pallas as pl
from jax.experimental.pallas import tpu as pltpu


# The 8 non-center taps of a 3x3 kernel, as (dh, dw) = (kh - 1, kw - 1).
_TAPS = tuple((kh - 1, kw - 1) for kh in range(3) for kw in range(3)
              if not (kh == 1 and kw == 1))


def _tap_masks(H, W, dtype=jnp.float32):
    """(8, H*W) validity masks for each tap's shifted read (zero padding=1)."""
    HW = H * W
    f = jnp.arange(HW, dtype=jnp.int32)
    row = f // W
    col = f % W
    masks = []
    for dh, dw in _TAPS:
        ok = jnp.ones((HW,), jnp.bool_)
        if dh > 0:
            ok = ok & (row < H - dh)
        elif dh < 0:
            ok = ok & (row >= -dh)
        if dw > 0:
            ok = ok & (col < W - dw)
        elif dw < 0:
            ok = ok & (col >= -dw)
        masks.append(ok)
    return jnp.stack(masks, axis=0).astype(dtype)      # (8, HW)


def _unet_down_conv_kernel(x_ref, m_ref, w1_ref, b1_ref, w2_ref, b2_ref,
                           out_ref, *, H, W):
    # x_ref:   (1, Cpad, H*W)    pooled image, channels in sublanes
    # m_ref:   (8, H*W)          per-tap boundary masks (0/1)
    # w1_ref:  (Coutp, 8*Cpad)   conv1 tap-stacked weights (center tap dropped)
    # b1_ref:  (Coutp, 1)
    # w2_ref:  (Coutp, 8*Coutp)  conv2 tap-stacked weights
    # b2_ref:  (Coutp, 1)
    # out_ref: (1, Coutp, H*W)   lane-dense output
    HW = H * W
    p = x_ref[0].astype(jnp.float32)

    def masked_conv3x3(a, w, b):
        shifted = []
        for t, (dh, dw) in enumerate(_TAPS):
            delta = dh * W + dw                   # static per tap
            # r[:, f] == a[:, (f + delta) % HW]; the wrap-around lanes are
            # exactly the out-of-bounds reads, zeroed by the mask below.
            r = pltpu.roll(a, (-delta) % HW, axis=1)
            shifted.append(r * m_ref[pl.ds(t, 1), :])
        s = jnp.concatenate(shifted, axis=0)      # (8*C, HW) im2col slab
        y = jnp.dot(w, s, preferred_element_type=jnp.float32)  # one MXU matmul
        return jnp.maximum(y + b, 0.0)

    h1 = masked_conv3x3(p, w1_ref[...], b1_ref[...])   # conv1 + ReLU
    h2 = masked_conv3x3(h1, w2_ref[...], b2_ref[...])  # conv2 + ReLU
    out_ref[0] = h2.astype(out_ref.dtype)


def _stack_taps(w):
    """(O, I, 3, 3) -> (O, 8*I), tap-major in _TAPS order.  The center tap is
    dropped, which is exactly CentralMaskedConv2d's zeroed center weight."""
    cols = [w[:, :, dh + 1, dw + 1] for (dh, dw) in _TAPS]
    return jnp.concatenate(cols, axis=1)


@jax.jit
def unet_down_pallas(x_nchw, w1, b1, w2, b2):
    """unetDown forward.  x_nchw: (N, Cin, Hin, Win) with even Hin/Win.
    w1: (Cout, Cin, 3, 3), b1: (Cout,), w2: (Cout, Cout, 3, 3), b2: (Cout,)."""
    N, Cin, Hin, Win = x_nchw.shape
    Cout = w1.shape[0]
    H, W = Hin // 2, Win // 2
    HW = H * W

    # ---- down stage: AvgPool2d(2, 2) (cheap XLA reshape+mean, 4x HBM shrink).
    x_pool = x_nchw.reshape(N, Cin, H, 2, W, 2).mean(axis=(3, 5))
    x_flat = x_pool.reshape(N, Cin, HW)            # free reshape: H*W -> lanes

    # Pad channels to a sublane multiple so in-kernel slabs are native tiles.
    Cpad = -(-Cin // 8) * 8
    Coutp = -(-Cout // 8) * 8
    if Cpad != Cin:
        x_flat = jnp.pad(x_flat, ((0, 0), (0, Cpad - Cin), (0, 0)))
        w1 = jnp.pad(w1, ((0, 0), (0, Cpad - Cin), (0, 0), (0, 0)))
    if Coutp != Cout:
        w1 = jnp.pad(w1, ((0, Coutp - Cout), (0, 0), (0, 0), (0, 0)))
        b1 = jnp.pad(b1, ((0, Coutp - Cout),))
        w2 = jnp.pad(w2, ((0, Coutp - Cout), (0, Coutp - Cout),
                          (0, 0), (0, 0)))
        b2 = jnp.pad(b2, ((0, Coutp - Cout),))

    # ---- weight / mask prep (central mask + tap stacking), outside the kernel.
    w1_t = _stack_taps(w1).astype(jnp.float32)     # (Coutp, 8*Cpad)
    w2_t = _stack_taps(w2).astype(jnp.float32)     # (Coutp, 8*Coutp)
    b1_c = b1.reshape(Coutp, 1).astype(jnp.float32)
    b2_c = b2.reshape(Coutp, 1).astype(jnp.float32)
    masks = _tap_masks(H, W)                       # (8, HW)

    flops = 2 * N * HW * Coutp * (8 * Cpad + 8 * Coutp)
    bytes_accessed = 4 * (N * Cpad * HW + N * Coutp * HW + masks.size
                          + w1_t.size + w2_t.size + 2 * Coutp)

    kernel = functools.partial(_unet_down_conv_kernel, H=H, W=W)

    out_flat = pl.pallas_call(
        kernel,
        out_shape=jax.ShapeDtypeStruct((N, Coutp, HW), x_nchw.dtype),
        grid_spec=pltpu.PrefetchScalarGridSpec(
            num_scalar_prefetch=0,
            grid=(N,),
            in_specs=[
                pl.BlockSpec((1, Cpad, HW), lambda n: (n, 0, 0)),
                pl.BlockSpec(masks.shape, lambda n: (0, 0)),
                pl.BlockSpec(w1_t.shape, lambda n: (0, 0)),
                pl.BlockSpec(b1_c.shape, lambda n: (0, 0)),
                pl.BlockSpec(w2_t.shape, lambda n: (0, 0)),
                pl.BlockSpec(b2_c.shape, lambda n: (0, 0)),
            ],
            out_specs=pl.BlockSpec((1, Coutp, HW), lambda n: (n, 0, 0)),
        ),
        compiler_params=pltpu.CompilerParams(
            dimension_semantics=("parallel",)),
        cost_estimate=pl.CostEstimate(
            flops=flops, transcendentals=0, bytes_accessed=bytes_accessed),
    )(x_flat, masks, w1_t, b1_c, w2_t, b2_c)

    out = out_flat[:, :Cout, :] if Coutp != Cout else out_flat
    return out.reshape(N, Cout, H, W)              # free reshape back to NCHW


def _reference(x_nchw, w1, b1, w2, b2):
    """Pure-JAX reference: AvgPool2d(2,2) + two central-masked conv+ReLU."""
    N, Cin, Hin, Win = x_nchw.shape
    xp = x_nchw.reshape(N, Cin, Hin // 2, 2, Win // 2, 2).mean(axis=(3, 5))
    mask = jnp.ones((3, 3), w1.dtype).at[1, 1].set(0.0)

    def conv_relu(x, w, b):
        y = lax.conv_general_dilated(
            x, w * mask[None, None, :, :], window_strides=(1, 1),
            padding=((1, 1), (1, 1)),
            dimension_numbers=("NCHW", "OIHW", "NCHW"))
        return jnp.maximum(y + b[None, :, None, None], 0.0)

    return conv_relu(conv_relu(xp, w1, b1), w2, b2)


if __name__ == "__main__":
    # Small shapes: batch=2, in_size=4, out_size=8, input spatial 32x32
    # (the AvgPool2d(2,2) stage makes the convs run on 16x16).
    N, Cin, Cout, Hin, Win = 2, 4, 8, 32, 32

    key = jax.random.PRNGKey(0)
    kx, kw1, kb1, kw2, kb2 = jax.random.split(key, 5)
    x = jax.random.normal(kx, (N, Cin, Hin, Win), dtype=jnp.float32)
    # Deterministic Conv2d-style fan-in scaled uniform parameters.
    lim1 = 1.0 / (Cin * 9) ** 0.5
    lim2 = 1.0 / (Cout * 9) ** 0.5
    w1 = jax.random.uniform(kw1, (Cout, Cin, 3, 3), jnp.float32, -lim1, lim1)
    b1 = jax.random.uniform(kb1, (Cout,), jnp.float32, -lim1, lim1)
    w2 = jax.random.uniform(kw2, (Cout, Cout, 3, 3), jnp.float32, -lim2, lim2)
    b2 = jax.random.uniform(kb2, (Cout,), jnp.float32, -lim2, lim2)

    out = jax.block_until_ready(unet_down_pallas(x, w1, b1, w2, b2))
    ref = jax.block_until_ready(_reference(x, w1, b1, w2, b2))

    assert out.shape == (N, Cout, Hin // 2, Win // 2), out.shape
    max_err = float(jnp.max(jnp.abs(out - ref)))
    assert jnp.allclose(out, ref, atol=1e-3, rtol=1e-3), max_err
    print("KERNEL_OK")
</pallas_src>

<mosaic_0001>
module attributes {stable_mosaic.version = 11 : i64} {
  func.func @_unet_down_conv_kernel(%arg0: i32, %arg1: memref<1x8x256xf32, #tpu.memory_space<vmem>>, %arg2: memref<8x256xf32, #tpu.memory_space<vmem>>, %arg3: memref<8x64xf32, #tpu.memory_space<vmem>>, %arg4: memref<8x1xf32, #tpu.memory_space<vmem>>, %arg5: memref<8x64xf32, #tpu.memory_space<vmem>>, %arg6: memref<8x1xf32, #tpu.memory_space<vmem>>, %arg7: memref<1x8x256xf32, #tpu.memory_space<vmem>>) attributes {dimension_semantics = [#tpu.dimension_semantics<parallel>], iteration_bounds = array<i64: 2>, scalar_prefetch = 0 : i64, scratch_operands = 0 : i64, tpu.core_type = #tpu.core_type<tc>, window_params = [{transform_indices = @transform_0, window_bounds = array<i64: 1, 8, 256>}, {pipeline_mode = #tpu.pipeline_mode<synchronous>, transform_indices = @transform_1, window_bounds = array<i64: 8, 256>}, {pipeline_mode = #tpu.pipeline_mode<synchronous>, transform_indices = @transform_2, window_bounds = array<i64: 8, 64>}, {pipeline_mode = #tpu.pipeline_mode<synchronous>, transform_indices = @transform_3, window_bounds = array<i64: 8, 1>}, {pipeline_mode = #tpu.pipeline_mode<synchronous>, transform_indices = @transform_4, window_bounds = array<i64: 8, 64>}, {pipeline_mode = #tpu.pipeline_mode<synchronous>, transform_indices = @transform_5, window_bounds = array<i64: 8, 1>}, {transform_indices = @transform_6, window_bounds = array<i64: 1, 8, 256>}]} {
    %c0 = arith.constant 0 : index
    %c0_0 = arith.constant 0 : index
    %c0_1 = arith.constant 0 : index
    %0 = vector.load %arg1[%c0, %c0_0, %c0_1] : memref<1x8x256xf32, #tpu.memory_space<vmem>>, vector<1x8x256xf32>
    %1 = vector.shape_cast %0 : vector<1x8x256xf32> to vector<8x256xf32>
    %c0_2 = arith.constant 0 : index
    %c0_3 = arith.constant 0 : index
    %2 = vector.load %arg3[%c0_2, %c0_3] : memref<8x64xf32, #tpu.memory_space<vmem>>, vector<8x64xf32>
    %c0_4 = arith.constant 0 : index
    %c0_5 = arith.constant 0 : index
    %3 = vector.load %arg4[%c0_4, %c0_5] : memref<8x1xf32, #tpu.memory_space<vmem>>, vector<8x1xf32>
    %c17_i32 = arith.constant 17 : i32
    %4 = tpu.dynamic_rotate %1 by %c17_i32 dim 1 : vector<8x256xf32>, i32 -> vector<8x256xf32>
    %c0_6 = arith.constant 0 : index
    %c0_7 = arith.constant 0 : index
    %5 = vector.load %arg2[%c0_6, %c0_7] : memref<8x256xf32, #tpu.memory_space<vmem>>, vector<1x256xf32>
    %6 = vector.broadcast %5 : vector<1x256xf32> to vector<8x256xf32>
    %7 = arith.mulf %4, %6 : vector<8x256xf32>
    %c16_i32 = arith.constant 16 : i32
    %8 = tpu.dynamic_rotate %1 by %c16_i32 dim 1 : vector<8x256xf32>, i32 -> vector<8x256xf32>
    %c1 = arith.constant 1 : index
    %c0_8 = arith.constant 0 : index
    %9 = vector.load %arg2[%c1, %c0_8] : memref<8x256xf32, #tpu.memory_space<vmem>>, vector<1x256xf32>
    %10 = vector.broadcast %9 : vector<1x256xf32> to vector<8x256xf32>
    %11 = arith.mulf %8, %10 : vector<8x256xf32>
    %c15_i32 = arith.constant 15 : i32
    %12 = tpu.dynamic_rotate %1 by %c15_i32 dim 1 : vector<8x256xf32>, i32 -> vector<8x256xf32>
    %c2 = arith.constant 2 : index
    %c0_9 = arith.constant 0 : index
    %13 = vector.load %arg2[%c2, %c0_9] : memref<8x256xf32, #tpu.memory_space<vmem>>, vector<1x256xf32>
    %14 = vector.broadcast %13 : vector<1x256xf32> to vector<8x256xf32>
    %15 = arith.mulf %12, %14 : vector<8x256xf32>
    %c1_i32 = arith.constant 1 : i32
    %16 = tpu.dynamic_rotate %1 by %c1_i32 dim 1 : vector<8x256xf32>, i32 -> vector<8x256xf32>
    %c3 = arith.constant 3 : index
    %c0_10 = arith.constant 0 : index
    %17 = vector.load %arg2[%c3, %c0_10] : memref<8x256xf32, #tpu.memory_space<vmem>>, vector<1x256xf32>
    %18 = vector.broadcast %17 : vector<1x256xf32> to vector<8x256xf32>
    %19 = arith.mulf %16, %18 : vector<8x256xf32>
    %c255_i32 = arith.constant 255 : i32
    %20 = tpu.dynamic_rotate %1 by %c255_i32 dim 1 : vector<8x256xf32>, i32 -> vector<8x256xf32>
    %c4 = arith.constant 4 : index
    %c0_11 = arith.constant 0 : index
    %21 = vector.load %arg2[%c4, %c0_11] : memref<8x256xf32, #tpu.memory_space<vmem>>, vector<1x256xf32>
    %22 = vector.broadcast %21 : vector<1x256xf32> to vector<8x256xf32>
    %23 = arith.mulf %20, %22 : vector<8x256xf32>
    %c241_i32 = arith.constant 241 : i32
    %24 = tpu.dynamic_rotate %1 by %c241_i32 dim 1 : vector<8x256xf32>, i32 -> vector<8x256xf32>
    %c5 = arith.constant 5 : index
    %c0_12 = arith.constant 0 : index
    %25 = vector.load %arg2[%c5, %c0_12] : memref<8x256xf32, #tpu.memory_space<vmem>>, vector<1x256xf32>
    %26 = vector.broadcast %25 : vector<1x256xf32> to vector<8x256xf32>
    %27 = arith.mulf %24, %26 : vector<8x256xf32>
    %c240_i32 = arith.constant 240 : i32
    %28 = tpu.dynamic_rotate %1 by %c240_i32 dim 1 : vector<8x256xf32>, i32 -> vector<8x256xf32>
    %c6 = arith.constant 6 : index
    %c0_13 = arith.constant 0 : index
    %29 = vector.load %arg2[%c6, %c0_13] : memref<8x256xf32, #tpu.memory_space<vmem>>, vector<1x256xf32>
    %30 = vector.broadcast %29 : vector<1x256xf32> to vector<8x256xf32>
    %31 = arith.mulf %28, %30 : vector<8x256xf32>
    %c239_i32 = arith.constant 239 : i32
    %32 = tpu.dynamic_rotate %1 by %c239_i32 dim 1 : vector<8x256xf32>, i32 -> vector<8x256xf32>
    %c7 = arith.constant 7 : index
    %c0_14 = arith.constant 0 : index
    %33 = vector.load %arg2[%c7, %c0_14] : memref<8x256xf32, #tpu.memory_space<vmem>>, vector<1x256xf32>
    %34 = vector.broadcast %33 : vector<1x256xf32> to vector<8x256xf32>
    %35 = arith.mulf %32, %34 : vector<8x256xf32>
    %36 = tpu.concatenate %7, %11, %15, %19, %23, %27, %31, %35 in 0 : vector<8x256xf32>, vector<8x256xf32>, vector<8x256xf32>, vector<8x256xf32>, vector<8x256xf32>, vector<8x256xf32>, vector<8x256xf32>, vector<8x256xf32> -> vector<64x256xf32>
    %cst = arith.constant dense<0.000000e+00> : vector<8x256xf32>
    %37 = tpu.matmul %2, %36, %cst {dimension_numbers = #tpu.dot_dimension_numbers<[1], [0], [0], [1], [0, 0, 1, 1], [], []>} : vector<8x64xf32>, vector<64x256xf32>, vector<8x256xf32> -> vector<8x256xf32>
    %38 = vector.broadcast %3 : vector<8x1xf32> to vector<8x256xf32>
    %39 = arith.addf %37, %38 : vector<8x256xf32>
    %cst_15 = arith.constant 0.000000e+00 : f32
    %40 = vector.broadcast %cst_15 : f32 to vector<8x256xf32>
    %41 = arith.maximumf %39, %40 : vector<8x256xf32>
    %c0_16 = arith.constant 0 : index
    %c0_17 = arith.constant 0 : index
    %42 = vector.load %arg5[%c0_16, %c0_17] : memref<8x64xf32, #tpu.memory_space<vmem>>, vector<8x64xf32>
    %c0_18 = arith.constant 0 : index
    %c0_19 = arith.constant 0 : index
    %43 = vector.load %arg6[%c0_18, %c0_19] : memref<8x1xf32, #tpu.memory_space<vmem>>, vector<8x1xf32>
    %c17_i32_20 = arith.constant 17 : i32
    %44 = tpu.dynamic_rotate %41 by %c17_i32_20 dim 1 : vector<8x256xf32>, i32 -> vector<8x256xf32>
    %c0_21 = arith.constant 0 : index
    %c0_22 = arith.constant 0 : index
    %45 = vector.load %arg2[%c0_21, %c0_22] : memref<8x256xf32, #tpu.memory_space<vmem>>, vector<1x256xf32>
    %46 = vector.broadcast %45 : vector<1x256xf32> to vector<8x256xf32>
    %47 = arith.mulf %44, %46 : vector<8x256xf32>
    %c16_i32_23 = arith.constant 16 : i32
    %48 = tpu.dynamic_rotate %41 by %c16_i32_23 dim 1 : vector<8x256xf32>, i32 -> vector<8x256xf32>
    %c1_24 = arith.constant 1 : index
    %c0_25 = arith.constant 0 : index
    %49 = vector.load %arg2[%c1_24, %c0_25] : memref<8x256xf32, #tpu.memory_space<vmem>>, vector<1x256xf32>
    %50 = vector.broadcast %49 : vector<1x256xf32> to vector<8x256xf32>
    %51 = arith.mulf %48, %50 : vector<8x256xf32>
    %c15_i32_26 = arith.constant 15 : i32
    %52 = tpu.dynamic_rotate %41 by %c15_i32_26 dim 1 : vector<8x256xf32>, i32 -> vector<8x256xf32>
    %c2_27 = arith.constant 2 : index
    %c0_28 = arith.constant 0 : index
    %53 = vector.load %arg2[%c2_27, %c0_28] : memref<8x256xf32, #tpu.memory_space<vmem>>, vector<1x256xf32>
    %54 = vector.broadcast %53 : vector<1x256xf32> to vector<8x256xf32>
    %55 = arith.mulf %52, %54 : vector<8x256xf32>
    %c1_i32_29 = arith.constant 1 : i32
    %56 = tpu.dynamic_rotate %41 by %c1_i32_29 dim 1 : vector<8x256xf32>, i32 -> vector<8x256xf32>
    %c3_30 = arith.constant 3 : index
    %c0_31 = arith.constant 0 : index
    %57 = vector.load %arg2[%c3_30, %c0_31] : memref<8x256xf32, #tpu.memory_space<vmem>>, vector<1x256xf32>
    %58 = vector.broadcast %57 : vector<1x256xf32> to vector<8x256xf32>
    %59 = arith.mulf %56, %58 : vector<8x256xf32>
    %c255_i32_32 = arith.constant 255 : i32
    %60 = tpu.dynamic_rotate %41 by %c255_i32_32 dim 1 : vector<8x256xf32>, i32 -> vector<8x256xf32>
    %c4_33 = arith.constant 4 : index
    %c0_34 = arith.constant 0 : index
    %61 = vector.load %arg2[%c4_33, %c0_34] : memref<8x256xf32, #tpu.memory_space<vmem>>, vector<1x256xf32>
    %62 = vector.broadcast %61 : vector<1x256xf32> to vector<8x256xf32>
    %63 = arith.mulf %60, %62 : vector<8x256xf32>
    %c241_i32_35 = arith.constant 241 : i32
    %64 = tpu.dynamic_rotate %41 by %c241_i32_35 dim 1 : vector<8x256xf32>, i32 -> vector<8x256xf32>
    %c5_36 = arith.constant 5 : index
    %c0_37 = arith.constant 0 : index
    %65 = vector.load %arg2[%c5_36, %c0_37] : memref<8x256xf32, #tpu.memory_space<vmem>>, vector<1x256xf32>
    %66 = vector.broadcast %65 : vector<1x256xf32> to vector<8x256xf32>
    %67 = arith.mulf %64, %66 : vector<8x256xf32>
    %c240_i32_38 = arith.constant 240 : i32
    %68 = tpu.dynamic_rotate %41 by %c240_i32_38 dim 1 : vector<8x256xf32>, i32 -> vector<8x256xf32>
    %c6_39 = arith.constant 6 : index
    %c0_40 = arith.constant 0 : index
    %69 = vector.load %arg2[%c6_39, %c0_40] : memref<8x256xf32, #tpu.memory_space<vmem>>, vector<1x256xf32>
    %70 = vector.broadcast %69 : vector<1x256xf32> to vector<8x256xf32>
    %71 = arith.mulf %68, %70 : vector<8x256xf32>
    %c239_i32_41 = arith.constant 239 : i32
    %72 = tpu.dynamic_rotate %41 by %c239_i32_41 dim 1 : vector<8x256xf32>, i32 -> vector<8x256xf32>
    %c7_42 = arith.constant 7 : index
    %c0_43 = arith.constant 0 : index
    %73 = vector.load %arg2[%c7_42, %c0_43] : memref<8x256xf32, #tpu.memory_space<vmem>>, vector<1x256xf32>
    %74 = vector.broadcast %73 : vector<1x256xf32> to vector<8x256xf32>
    %75 = arith.mulf %72, %74 : vector<8x256xf32>
    %76 = tpu.concatenate %47, %51, %55, %59, %63, %67, %71, %75 in 0 : vector<8x256xf32>, vector<8x256xf32>, vector<8x256xf32>, vector<8x256xf32>, vector<8x256xf32>, vector<8x256xf32>, vector<8x256xf32>, vector<8x256xf32> -> vector<64x256xf32>
    %cst_44 = arith.constant dense<0.000000e+00> : vector<8x256xf32>
    %77 = tpu.matmul %42, %76, %cst_44 {dimension_numbers = #tpu.dot_dimension_numbers<[1], [0], [0], [1], [0, 0, 1, 1], [], []>} : vector<8x64xf32>, vector<64x256xf32>, vector<8x256xf32> -> vector<8x256xf32>
    %78 = vector.broadcast %43 : vector<8x1xf32> to vector<8x256xf32>
    %79 = arith.addf %77, %78 : vector<8x256xf32>
    %cst_45 = arith.constant 0.000000e+00 : f32
    %80 = vector.broadcast %cst_45 : f32 to vector<8x256xf32>
    %81 = arith.maximumf %79, %80 : vector<8x256xf32>
    %c0_46 = arith.constant 0 : index
    %c0_47 = arith.constant 0 : index
    %c0_48 = arith.constant 0 : index
    %82 = vector.load %arg7[%c0_46, %c0_47, %c0_48] : memref<1x8x256xf32, #tpu.memory_space<vmem>>, vector<1x8x256xf32>
    %83 = vector.shape_cast %82 : vector<1x8x256xf32> to vector<8x256xf32>
    %84 = vector.shape_cast %81 : vector<8x256xf32> to vector<1x8x256xf32>
    tpu.vector_store %arg7[%c0_46, %c0_47, %c0_48], %84 {strides = array<i32>} : memref<1x8x256xf32, #tpu.memory_space<vmem>>, vector<1x8x256xf32>,
    return
  }
  func.func @transform_0(%arg0: i32) -> (i32, i32, i32) {
    %c0_i32 = arith.constant 0 : i32
    %c0_i32_0 = arith.constant 0 : i32
    %c0_i32_1 = arith.constant 0 : i32
    return %arg0, %c0_i32, %c0_i32_0 : i32, i32, i32
  }
  func.func @transform_1(%arg0: i32) -> (i32, i32) {
    %c0_i32 = arith.constant 0 : i32
    %c0_i32_0 = arith.constant 0 : i32
    %c0_i32_1 = arith.constant 0 : i32
    return %c0_i32, %c0_i32_0 : i32, i32
  }
  func.func @transform_2(%arg0: i32) -> (i32, i32) {
    %c0_i32 = arith.constant 0 : i32
    %c0_i32_0 = arith.constant 0 : i32
    %c0_i32_1 = arith.constant 0 : i32
    return %c0_i32, %c0_i32_0 : i32, i32
  }
  func.func @transform_3(%arg0: i32) -> (i32, i32) {
    %c0_i32 = arith.constant 0 : i32
    %c0_i32_0 = arith.constant 0 : i32
    %c0_i32_1 = arith.constant 0 : i32
    return %c0_i32, %c0_i32_0 : i32, i32
  }
  func.func @transform_4(%arg0: i32) -> (i32, i32) {
    %c0_i32 = arith.constant 0 : i32
    %c0_i32_0 = arith.constant 0 : i32
    %c0_i32_1 = arith.constant 0 : i32
    return %c0_i32, %c0_i32_0 : i32, i32
  }
  func.func @transform_5(%arg0: i32) -> (i32, i32) {
    %c0_i32 = arith.constant 0 : i32
    %c0_i32_0 = arith.constant 0 : i32
    %c0_i32_1 = arith.constant 0 : i32
    return %c0_i32, %c0_i32_0 : i32, i32
  }
  func.func @transform_6(%arg0: i32) -> (i32, i32, i32) {
    %c0_i32 = arith.constant 0 : i32
    %c0_i32_0 = arith.constant 0 : i32
    %c0_i32_1 = arith.constant 0 : i32
    return %arg0, %c0_i32, %c0_i32_0 : i32, i32, i32
  }
}

</mosaic_0001>

<bundles_post_ra>
// kernel: unet_down_pallas.1
= control target key start
LH: loop header
LB: loop body
LE: loop exit
PB: predicated region body
PF: predicated region fallthrough
CT: control target
= control target key end

     0   :  { %s845_s21 = smov 0   ;;  %s1097_s0 = inlined_call_operand.vmem [shape: f32[2,8,256], index: 0, kind: input, shape index: {}]   ;;  %s1098_s1 = inlined_call_operand.vmem [shape: f32[8,256], index: 1, kind: input, shape index: {}]   ;;  %s1099_s2 = inlined_call_operand.vmem [shape: f32[8,64], index: 2, kind: input, shape index: {}]   ;;  %s1100_s3 = inlined_call_operand.vmem [shape: f32[8,1], index: 3, kind: input, shape index: {}]   ;;  %s1101_s4 = inlined_call_operand.vmem [shape: f32[8,64], index: 4, kind: input, shape index: {}]   ;;  %s1102_s5 = inlined_call_operand.vmem [shape: f32[8,1], index: 5, kind: input, shape index: {}]   ;;  %s1103_s6 = inlined_call_operand.vmem [shape: f32[2,8,256], index: 6, kind: output, shape index: {}]  }
   0x1 LB: > { %s719_s22 = sadd.s32 4294967295, %s798_s21   ;;  %p723_p0 = scmp.ge.s32.totalorder %s798_s21, 1  ;;  %s798_s21 = sphi %s845_s21, %s16_s21  }
   0x2   : > { %p212_p1 = scmp.lt.s32.totalorder %s798_s21, 3 }
   0x4   : > { %p213_p2 = pnand %p723_p0, %p212_p1 }
   0x5   : > { %p242_p3 = scmp.lt.s32.totalorder (!%p213_p2), %s719_s22, 1  ;;  %s800_s27 = smov (!%p213_p2), 16   ;;  %v806_v2 = vmov (!%p213_p2), 0.0   ;;  %v808_v3 = vmov (!%p213_p2), 0   ;;  %v255_v4 = vld [vmem:[%s1100_s3] sm:$0xff] (!%p213_p2)  ;;  %v260_v5 = vlaneseq (!%p213_p2)  ;;  %vm438_vm8 = vcmask (!%p213_p2), 523264  }
   0x6   : > { %216 = sbr.rel (%p213_p2) target bundleno = 759 (0x2f7), region = 44  ;;  %s801_s28 = smov (!%p213_p2), 17   ;;  %506 = vmatprep.mubr.f32.mxu0 (!%p213_p2), %v806_v2  ;;  %653 = vmatprep.mubr.f32.mxu1 (!%p213_p2), %v806_v2  ;;  %v728_v10 = vld [vmem:[%s1098_s1 + $0x1] ss:$8 sm:$0x3] (!%p213_p2) }
   0x7   : > { %s802_s29 = smov (!%p213_p2), 15   ;;  %s803_s30 = smov (!%p213_p2), 1   ;;  %791 = vset.pattern.permute.xlu0 (!%p213_p2), %v808_v3  ;;  %v268_v6 = vshrl.u32 (!%p213_p2), %v260_v5, 7  ;;  %v880_v7 = vand.u32 (!%p213_p2), 127, %v260_v5 }
   0x8   : > { %s804_s7 = smov (!%p213_p2), 127   ;;  %s805_s8 = smov (!%p213_p2), 113   ;;  %v265_v11 = vld [vmem:[%s1098_s1] ss:$8 sm:$0x3] (!%p213_p2) }
   0x9   : > { %s807_s9 = smov (!%p213_p2), 112   ;;  %s809_s10 = smov (!%p213_p2), 111   ;;  %v882_v8 = vsub.s32 (!%p213_p2), 0, %v268_v6  ;;  %v884_v9 = vsub.s32 (!%p213_p2), 1, %v268_v6  ;;  %vm283_vm0 = vcmp.lt.s32.totalorder (!%p213_p2), %v880_v7, 16  ;;  %vm262_vm1 = vcmp.lt.s32.totalorder (!%p213_p2), %v880_v7, 17 }
   0xa   : > { %v729_v28 = vld [vmem:[%s1098_s1 + $0x2] ss:$8 sm:$0x3] (!%p213_p2)  ;;  %v730_v29 = vld [vmem:[%s1098_s1 + $0x3] ss:$8 sm:$0x3] (!%p213_p2) }
   0xb   : > { %v895_v14 = vrot.slane (!%p213_p2), %v728_v10, %v882_v8  ;;  %v898_v15 = vrot.slane (!%p213_p2), %v265_v11, %v882_v8  ;;  %v901_v16 = vrot.slane (!%p213_p2), %v265_v11, %v884_v9  ;;  %v904_v17 = vrot.slane (!%p213_p2), %v728_v10, %v884_v9  ;;  %v731_v48 = vld [vmem:[%s1098_s1 + $0x4] ss:$8 sm:$0x3] (!%p213_p2)  ;;  %v732_v49 = vld [vmem:[%s1098_s1 + $0x5] ss:$8 sm:$0x3] (!%p213_p2) }
   0xc   : > { %vm305_vm2 = vcmp.lt.s32.totalorder (!%p213_p2), %v880_v7, 15  ;;  %vm327_vm3 = vcmp.lt.s32.totalorder (!%p213_p2), %v880_v7, 1  ;;  %v927_v34 = vrot.slane (!%p213_p2), %v729_v28, %v882_v8  ;;  %v930_v35 = vrot.slane (!%p213_p2), %v729_v28, %v884_v9  ;;  %v734_v5 = vld [vmem:[%s1098_s1 + $0x7] ss:$8 sm:$0x3] (!%p213_p2) }
   0xd   : > { %s1105_s22 = smov (!%p242_p3, %s719_s22), 1  ;;  %v933_v36 = vrot.slane %v730_v29, %v882_v8  ;;  %v936_v37 = vrot.slane %v730_v29, %v884_v9  ;;  %vm349_vm4 = vcmp.lt.s32.totalorder %v880_v7, 127  ;;  %v958_v54 = vrot.slane %v731_v48, %v882_v8 }
   0xe   : > { %s739_s23 = sshll.u32 %s1105_s22, 4  ;;  %v961_v55 = vrot.slane %v731_v48, %v884_v9  ;;  %vm371_vm5 = vcmp.lt.s32.totalorder %v880_v7, 113  ;;  %v965_v56 = vrot.slane %v732_v49, %v882_v8  ;;  %v968_v57 = vrot.slane %v732_v49, %v884_v9 }
   0xf   : > { %s246_s26 = scalar_lea.vmem %s1097_s0, %s739_s23  ;;  %vm393_vm6 = vcmp.lt.s32.totalorder %v880_v7, 112  ;;  %vm415_vm7 = vcmp.lt.s32.totalorder %v880_v7, 111 }
  0x10   : > { %v252_v0 = vld [vmem:[%s246_s26] sm:$0xff]  ;;  %v253_v1 = vld [vmem:[%s246_s26 + $0x8] sm:$0xff] }
  0x11   : > { %279 = vrot.lane.b32.xlu1 %v252_v0, %s800_s27  ;;  %256 = vrot.lane.b32.xlu0 %v252_v0, %s801_s28 }
  0x15   : > { %281 = vrot.lane.b32.xlu1 %v253_v1, %s800_s27  ;;  %258 = vrot.lane.b32.xlu0 %v253_v1, %s801_s28 }
  0x19   : > { %303 = vrot.lane.b32.xlu1 %v253_v1, %s802_s29  ;;  %301 = vrot.lane.b32.xlu0 %v252_v0, %s802_s29 }
  0x1d   : > { %325 = vrot.lane.b32.xlu1 %v253_v1, %s803_s30  ;;  %323 = vrot.lane.b32.xlu0 %v252_v0, %s803_s30 }
  0x21   : > { %347 = vrot.lane.b32.xlu1 %v253_v1, %s804_s7  ;;  %345 = vrot.lane.b32.xlu0 %v252_v0, %s804_s7 }
  0x25   : > { %369 = vrot.lane.b32.xlu1 %v253_v1, %s805_s8  ;;  %367 = vrot.lane.b32.xlu0 %v252_v0, %s805_s8 }
  0x29   : > { %391 = vrot.lane.b32.xlu1 %v253_v1, %s807_s9  ;;  %389 = vrot.lane.b32.xlu0 %v252_v0, %s807_s9 }
  0x2d   : > { %413 = vrot.lane.b32.xlu1 %v253_v1, %s809_s10  ;;  %411 = vrot.lane.b32.xlu0 %v252_v0, %s809_s10 }
  0x31   : > { %435 = vperm.xlu0 %791, %v255_v4   ;;  %v733_v4 = vld [vmem:[%s1098_s1 + $0x6] ss:$8 sm:$0x3] }
  0x83   : > { %v280_v12 = vpop.permute.xlu1 %279  ;;  %v257_v13 = vpop.permute.xlu0 %256 }
  0x87   : > { %v282_v18 = vpop.permute.xlu1 %281  ;;  %v259_v19 = vpop.permute.xlu0 %258 }
  0x88   : > { %v284_v20 = vsel %vm283_vm0, %v280_v12, %v282_v18  ;;  %v285_v21 = vsel %vm283_vm0, %v282_v18, %v280_v12  ;;  %v263_v22 = vsel %vm262_vm1, %v257_v13, %v259_v19  ;;  %v264_v23 = vsel %vm262_vm1, %v259_v19, %v257_v13 }
  0x89   : > { %v299_v24 = vmul.f32 %v895_v14, %v285_v21  ;;  %v277_v25 = vmul.f32 %v898_v15, %v264_v23  ;;  %v278_v26 = vmul.f32 %v901_v16, %v263_v22  ;;  %v300_v27 = vmul.f32 %v904_v17, %v284_v20 }
  0x8a   : > { %v990_v13 = vrot.slane %v733_v4, %v882_v8  ;;  %v993_v18 = vrot.slane %v733_v4, %v884_v9  ;;  %v997_v19 = vrot.slane %v734_v5, %v882_v8  ;;  %v1000_v20 = vrot.slane %v734_v5, %v884_v9 }
  0x8b   : > { %v304_v30 = vpop.permute.xlu1 %303  ;;  %v302_v31 = vpop.permute.xlu0 %301  ;;  %v741_v32 = vpack.c.bf16 %v300_v27, %v278_v26  ;;  %v743_v33 = vpack.c.bf16 %v299_v24, %v277_v25 }
  0x8c   : > { %v306_v38 = vsel %vm305_vm2, %v302_v31, %v304_v30  ;;  %v307_v39 = vsel %vm305_vm2, %v304_v30, %v302_v31  ;;  %v254_v31 = vld [vmem:[%s1099_s2] sm:$0xff] }
  0x8d   : > { %742 = vmatprep.subr.bf16.mxu0 %v741_v32  ;;  %v321_v44 = vmul.f32 %v927_v34, %v307_v39  ;;  %v322_v45 = vmul.f32 %v930_v35, %v306_v38 }
  0x8e   : > { %744 = vmatpush1.bf16.msra.mxu0 %v743_v33 }
  0x8f   : > { %v326_v40 = vpop.permute.xlu1 %325  ;;  %v324_v41 = vpop.permute.xlu0 %323 }
  0x90   : > { %v328_v42 = vsel %vm327_vm3, %v324_v41, %v326_v40  ;;  %v329_v43 = vsel %vm327_vm3, %v326_v40, %v324_v41 }
  0x91   : > { %v343_v46 = vmul.f32 %v933_v36, %v329_v43  ;;  %v344_v47 = vmul.f32 %v936_v37, %v328_v42  ;;  %v516_v43 = vld [vmem:[%s1102_s5] sm:$0xff] }
  0x93   : > { %v348_v50 = vpop.permute.xlu1 %347  ;;  %v346_v51 = vpop.permute.xlu0 %345  ;;  %v745_v52 = vpack.c.bf16 %v344_v47, %v322_v45  ;;  %v747_v53 = vpack.c.bf16 %v343_v46, %v321_v44 }
  0x94   : > { %v350_v58 = vsel %vm349_vm4, %v346_v51, %v348_v50  ;;  %v351_v59 = vsel %vm349_vm4, %v348_v50, %v346_v51 }
  0x95   : > { %746 = vmatprep.subr.bf16.mxu0 %v745_v52  ;;  %v365_v0 = vmul.f32 %v958_v54, %v350_v58  ;;  %v366_v1 = vmul.f32 %v961_v55, %v351_v59 }
  0x96   : > { %748 = vmatpush1.bf16.msra.mxu0 %v747_v53 }
  0x97   : > { %v370_v60 = vpop.permute.xlu1 %369  ;;  %v368_v61 = vpop.permute.xlu0 %367 }
  0x98   : > { %v372_v62 = vsel %vm371_vm5, %v368_v61, %v370_v60  ;;  %v373_v63 = vsel %vm371_vm5, %v370_v60, %v368_v61 }
  0x99   : > { %v387_v2 = vmul.f32 %v965_v56, %v372_v62  ;;  %v388_v3 = vmul.f32 %v968_v57, %v373_v63 }
  0x9b   : > { %v392_v6 = vpop.permute.xlu1 %391  ;;  %v390_v10 = vpop.permute.xlu0 %389  ;;  %v749_v11 = vpack.c.bf16 %v388_v3, %v366_v1  ;;  %v751_v12 = vpack.c.bf16 %v387_v2, %v365_v0 }
  0x9c   : > { %v394_v21 = vsel %vm393_vm6, %v390_v10, %v392_v6  ;;  %v395_v22 = vsel %vm393_vm6, %v392_v6, %v390_v10 }
  0x9d   : > { %750 = vmatprep.subr.bf16.mxu0 %v749_v11  ;;  %v409_v8 = vmul.f32 %v990_v13, %v394_v21  ;;  %v410_v9 = vmul.f32 %v993_v18, %v395_v22 }
  0x9e   : > { %752 = vmatpush1.bf16.msra.mxu0 %v751_v12 }
  0x9f   : > { %v414_v23 = vpop.permute.xlu1 %413  ;;  %v412_v24 = vpop.permute.xlu0 %411 }
  0xa0   : > { %v416_v25 = vsel %vm415_vm7, %v412_v24, %v414_v23  ;;  %v417_v26 = vsel %vm415_vm7, %v414_v23, %v412_v24 }
  0xa1   : > { %v431_v27 = vmul.f32 %v997_v19, %v416_v25  ;;  %v432_v28 = vmul.f32 %v1000_v20, %v417_v26 }
  0xa3   : > { %v753_v29 = vpack.c.bf16 %v432_v28, %v410_v9  ;;  %v755_v30 = vpack.c.bf16 %v431_v27, %v409_v8 }
  0xa5   : > { %754 = vmatprep.subr.bf16.mxu0 %v753_v29 }
  0xa6   : > { %756 = vmatpush1.bf16.msra.mxu0 %v755_v30 }
  0xa9   : > { %735 = vmatmul.mubr.msk.f32.vlgmr.msra.gmra.mrb[0].mxu0 %vm438_vm8, %v254_v31 }
  0xb0   : > { %v436_v32 = vpop.permute.xlu0 %435 }
 0x17c   : > { %v508_v33 = vpop.f32.mrb[0].mxu0 }
 0x17d   : > { %v509_v38 = vadd.f32 %v508_v33, %v436_v32  ;;  %v510_v39 = vpop.f32.mrb[1].mxu0 }
 0x17e   : > { %v511_v41 = vadd.f32 %v510_v39, %v436_v32 }
 0x17f   : > { %v513_v40 = vmax.f32 %v509_v38, 0.0 }
 0x180   : > { %v514_v42 = vmax.f32 %v511_v41, 0.0  ;;  %v515_v41 = vld [vmem:[%s1101_s4] sm:$0xff] }
 0x181   : > { %525 = vrot.lane.b32.xlu0 %v513_v40, %s800_s27  ;;  %517 = vrot.lane.b32.xlu1 %v513_v40, %s801_s28 }
 0x185   : > { %533 = vrot.lane.b32.xlu0 %v513_v40, %s802_s29  ;;  %519 = vrot.lane.b32.xlu1 %v514_v42, %s801_s28 }
 0x189   : > { %541 = vrot.lane.b32.xlu0 %v513_v40, %s803_s30  ;;  %527 = vrot.lane.b32.xlu1 %v514_v42, %s800_s27 }
 0x18d   : > { %549 = vrot.lane.b32.xlu0 %v513_v40, %s804_s7  ;;  %535 = vrot.lane.b32.xlu1 %v514_v42, %s802_s29 }
 0x191   : > { %557 = vrot.lane.b32.xlu0 %v513_v40, %s805_s8  ;;  %543 = vrot.lane.b32.xlu1 %v514_v42, %s803_s30 }
 0x195   : > { %565 = vrot.lane.b32.xlu0 %v513_v40, %s807_s9  ;;  %551 = vrot.lane.b32.xlu1 %v514_v42, %s804_s7 }
 0x199   : > { %573 = vrot.lane.b32.xlu0 %v513_v40, %s809_s10  ;;  %559 = vrot.lane.b32.xlu1 %v514_v42, %s805_s8  ;;  %s251_s8 = scalar_lea.vmem %s1103_s6, %s739_s23 }
 0x19d   : > { %583 = vperm.xlu0 %791, %v516_v43   ;;  %567 = vrot.lane.b32.xlu1 %v514_v42, %s807_s9 }
 0x1a1   : > { %575 = vrot.lane.b32.xlu1 %v514_v42, %s809_s10 }
 0x1f3   : > { %v526_v44 = vpop.permute.xlu0 %525  ;;  %v518_v45 = vpop.permute.xlu1 %517 }
 0x1f7   : > { %v534_v46 = vpop.permute.xlu0 %533  ;;  %v520_v47 = vpop.permute.xlu1 %519 }
 0x1f8   : > { %v521_v48 = vsel %vm262_vm1, %v518_v45, %v520_v47  ;;  %v522_v49 = vsel %vm262_vm1, %v520_v47, %v518_v45 }
 0x1f9   : > { %v523_v58 = vmul.f32 %v522_v49, %v898_v15  ;;  %v524_v60 = vmul.f32 %v521_v48, %v901_v16 }
 0x1fb   : > { %v542_v50 = vpop.permute.xlu0 %541  ;;  %v528_v51 = vpop.permute.xlu1 %527 }
 0x1fc   : > { %v529_v52 = vsel %vm283_vm0, %v526_v44, %v528_v51  ;;  %v530_v53 = vsel %vm283_vm0, %v528_v51, %v526_v44 }
 0x1fd   : > { %v531_v59 = vmul.f32 %v530_v53, %v895_v14  ;;  %v532_v61 = vmul.f32 %v529_v52, %v904_v17 }
 0x1ff   : > { %v536_v62 = vpop.permute.xlu1 %535  ;;  %v757_v63 = vpack.c.bf16 %v532_v61, %v524_v60  ;;  %v759_v0 = vpack.c.bf16 %v531_v59, %v523_v58  ;;  %v550_v1 = vpop.permute.xlu0 %549 }
 0x200   : > { %v537_v2 = vsel %vm305_vm2, %v534_v46, %v536_v62  ;;  %v538_v3 = vsel %vm305_vm2, %v536_v62, %v534_v46 }
 0x201   : > { %758 = vmatprep.subr.bf16.mxu1 %v757_v63  ;;  %v539_v16 = vmul.f32 %v538_v3, %v927_v34  ;;  %v540_v17 = vmul.f32 %v537_v2, %v930_v35 }
 0x202   : > { %760 = vmatpush1.bf16.msra.mxu1 %v759_v0 }
 0x203   : > { %v544_v4 = vpop.permute.xlu1 %543  ;;  %v558_v10 = vpop.permute.xlu0 %557 }
 0x204   : > { %v545_v14 = vsel %vm327_vm3, %v542_v50, %v544_v4  ;;  %v546_v15 = vsel %vm327_vm3, %v544_v4, %v542_v50 }
 0x205   : > { %v547_v5 = vmul.f32 %v546_v15, %v933_v36  ;;  %v548_v6 = vmul.f32 %v545_v14, %v936_v37 }
 0x207   : > { %v552_v11 = vpop.permute.xlu1 %551  ;;  %v761_v12 = vpack.c.bf16 %v548_v6, %v540_v17  ;;  %v763_v21 = vpack.c.bf16 %v547_v5, %v539_v16  ;;  %v566_v36 = vpop.permute.xlu0 %565 }
 0x208   : > { %v553_v22 = vsel %vm349_vm4, %v550_v1, %v552_v11  ;;  %v554_v23 = vsel %vm349_vm4, %v552_v11, %v550_v1 }
 0x209   : > { %762 = vmatprep.subr.bf16.mxu1 %v761_v12  ;;  %v555_v37 = vmul.f32 %v553_v22, %v958_v54  ;;  %v556_v25 = vmul.f32 %v554_v23, %v961_v55 }
 0x20a   : > { %764 = vmatpush1.bf16.msra.mxu1 %v763_v21 }
 0x20b   : > { %v560_v24 = vpop.permute.xlu1 %559  ;;  %v574_v31 = vpop.permute.xlu0 %573 }
 0x20c   : > { %v561_v34 = vsel %vm371_vm5, %v558_v10, %v560_v24  ;;  %v562_v35 = vsel %vm371_vm5, %v560_v24, %v558_v10 }
 0x20d   : > { %v563_v26 = vmul.f32 %v561_v34, %v965_v56  ;;  %v564_v8 = vmul.f32 %v562_v35, %v968_v57 }
 0x20f   : > { %v568_v9 = vpop.permute.xlu1 %567  ;;  %v765_v27 = vpack.c.bf16 %v564_v8, %v556_v25  ;;  %v767_v28 = vpack.c.bf16 %v563_v26, %v555_v37 }
 0x210   : > { %v569_v29 = vsel %vm393_vm6, %v566_v36, %v568_v9  ;;  %v570_v30 = vsel %vm393_vm6, %v568_v9, %v566_v36 }
 0x211   : > { %766 = vmatprep.subr.bf16.mxu1 %v765_v27  ;;  %v571_v56 = vmul.f32 %v569_v29, %v990_v13  ;;  %v572_v57 = vmul.f32 %v570_v30, %v993_v18 }
 0x212   : > { %768 = vmatpush1.bf16.msra.mxu1 %v767_v28 }
 0x213   : > { %v576_v32 = vpop.permute.xlu1 %575 }
 0x214   : > { %v577_v54 = vsel %vm415_vm7, %v574_v31, %v576_v32  ;;  %v578_v55 = vsel %vm415_vm7, %v576_v32, %v574_v31 }
 0x215   : > { %v579_v33 = vmul.f32 %v577_v54, %v997_v19  ;;  %v580_v38 = vmul.f32 %v578_v55, %v1000_v20 }
 0x217   : > { %v769_v39 = vpack.c.bf16 %v580_v38, %v572_v57  ;;  %v771_v40 = vpack.c.bf16 %v579_v33, %v571_v56 }
 0x219   : > { %770 = vmatprep.subr.bf16.mxu1 %v769_v39 }
 0x21a   : > { %772 = vmatpush1.bf16.msra.mxu1 %v771_v40 }
 0x21c   : > { %v584_v7 = vpop.permute.xlu0 %583 }
 0x21d   : > { %736 = vmatmul.mubr.msk.f32.vlgmr.msra.gmra.mrb[0].mxu1 %vm438_vm8, %v515_v41 }
 0x2f0   : > { %v655_v42 = vpop.f32.mrb[0].mxu1 }
 0x2f1   : > { %v656_v43 = vadd.f32 %v655_v42, %v584_v7  ;;  %v657_v13 = vpop.f32.mrb[1].mxu1 }
 0x2f2   : > { %v658_v18 = vadd.f32 %v657_v13, %v584_v7 }
 0x2f3   : > { %v660_v19 = vmax.f32 %v656_v43, 0.0 }
 0x2f4   : > { %v661_v20 = vmax.f32 %v658_v18, 0.0 }
 0x2f5   : > { %662 = vst [vmem:[%s251_s8] sm:$0xff] %v660_v19 }
 0x2f6   : > { %663 = vst [vmem:[%s251_s8 + $0x8] sm:$0xff] %v661_v20 }
 0x2f7 PF: > { %s16_s21 = sadd.s32 1, %s798_s21  }
 0x2f8   : > { %p13_p4 = scmp.ge.s32.totalorder %s16_s21, 4  }
 0x2fa   :  { %15 = sbr.rel (!%p13_p4) target bundleno = 1 (0x1), region = 81 }

</bundles_post_ra>
